<compile_context>
chip_gen: v6e
topology: v6e:2x2x1
jax: 0.10.0
libtpu: 0.0.40
codegen_flags: <defaults>
</compile_context>

<pallas_src>
import functools
import math

import jax
import jax.numpy as jnp
from jax.experimental import pallas as pl
from jax.experimental.pallas import tpu as pltpu


# ------------------------------ small helpers ------------------------------ #

def _round_up(v, m):
    return ((v + m - 1) // m) * m


def _tpu_vmem_bytes():
    """Physical VMEM capacity; conservative 64 MiB fallback if query fails."""
    try:
        info = pltpu.get_tpu_info()
        for attr in ("vmem_capacity_bytes", "vmem_bytes", "vmem_capacity"):
            v = getattr(info, attr, None)
            if v:
                return int(v)
    except Exception:
        pass
    return 64 * 1024 * 1024


def _pick_row_tile(num_rows, lane, itemsize, target_bytes):
    """Return (tile_rows, padded_rows).

    Prefers an 8-aligned divisor of num_rows within the byte budget (no pad
    copy); otherwise zero-pads the row dim up to a multiple of the max tile
    (zeros are stats-neutral, padded output rows are sliced off).
    """
    bytes_per_row = lane * itemsize
    max_rows = max(8, (target_bytes // bytes_per_row) // 8 * 8)
    if num_rows <= max_rows:
        return num_rows, num_rows           # single full-dim tile (any alignment)
    floor = max(8, max_rows // 8)           # never degrade to tiny 8-row tiles
    t = max_rows
    while t >= floor:
        if num_rows % t == 0:
            return t, num_rows
        t -= 8
    return max_rows, _round_up(num_rows, max_rows)


# ----------------------------- Pallas kernels ------------------------------ #

def _fused_kernel(x_ref, fold_ref, exp_ref, mw_ref, vw_ref, w_ref, b_ref, o_ref,
                  *, n_elem, chunk, eps):
    """Single-call path: x resident in VMEM; stats + normalize, one HBM read."""
    f32 = jnp.float32
    B, R, LANE = x_ref.shape
    n_full = R // chunk
    rem = R - n_full * chunk

    def _start(i):
        s = i * chunk
        return pl.multiple_of(s, 8) if chunk % 8 == 0 else s

    def _tile_sums(xc):
        return jnp.sum(xc, axis=1), jnp.sum(xc * xc, axis=1)

    # -- phase 1: per-(b, lane) sum / sum-of-squares over row chunks ----------
    def body(i, carry):
        s_acc, q_acc = carry
        xc = x_ref[:, pl.ds(_start(i), chunk), :].astype(f32)     # (B, chunk, LANE)
        ds_, dq_ = _tile_sums(xc)
        return s_acc + ds_, q_acc + dq_

    zeros = jnp.zeros((B, LANE), f32)
    sums, sumsq = jax.lax.fori_loop(0, n_full, body, (zeros, zeros))
    if rem:
        xc = x_ref[:, pl.ds(n_full * chunk, rem), :].astype(f32)
        ds_, dq_ = _tile_sums(xc)
        sums, sumsq = sums + ds_, sumsq + dq_

    # Lane-group fold (lane -> channel) as a tiny 0/1 matmul on the idle MXU.
    fold = fold_ref[...]                                          # (LANE, C)
    sum_c = jnp.dot(sums, fold, preferred_element_type=f32)       # (B, C)
    sq_c = jnp.dot(sumsq, fold, preferred_element_type=f32)       # (B, C)

    # -- phase 2: switchable statistics + affine fold (all (B, C)-sized) ------
    n = f32(n_elem)
    denom = f32(max(n_elem - 1, 1))      # torch .var() is unbiased; guard N==1
    mean_in = sum_c / n
    var_in = (sq_c - n * mean_in * mean_in) / denom
    temp = var_in + mean_in * mean_in
    mean_ln = jnp.mean(mean_in, axis=1, keepdims=True)
    var_ln = jnp.mean(temp, axis=1, keepdims=True) - mean_ln * mean_ln
    mean_bn = jnp.mean(mean_in, axis=0, keepdims=True)
    var_bn = jnp.mean(temp, axis=0, keepdims=True) - mean_bn * mean_bn

    mean = mw_ref[0] * mean_in + mw_ref[1] * mean_ln + mw_ref[2] * mean_bn
    var = vw_ref[0] * var_in + vw_ref[1] * var_ln + vw_ref[2] * var_bn
    var = jnp.maximum(var, 0.0)          # E[x^2]-E[x]^2 cancellation guard
    rstd = jax.lax.rsqrt(var + f32(eps))

    scale_c = rstd * w_ref[...]                           # (B, C)
    shift_c = b_ref[...] - mean * scale_c                 # (B, C)
    expand = exp_ref[...]                                  # (C, LANE)
    scale_l = jnp.dot(scale_c, expand, preferred_element_type=f32)[:, None, :]
    shift_l = jnp.dot(shift_c, expand, preferred_element_type=f32)[:, None, :]

    # -- phase 3: normalize from the resident copy (no second HBM read) -------
    def body2(i, _):
        st = _start(i)
        xc = x_ref[:, pl.ds(st, chunk), :].astype(f32)
        o_ref[:, pl.ds(st, chunk), :] = (xc * scale_l + shift_l).astype(o_ref.dtype)
        return 0

    jax.lax.fori_loop(0, n_full, body2, 0)
    if rem:
        st = n_full * chunk
        xc = x_ref[:, pl.ds(st, rem), :].astype(f32)
        o_ref[:, pl.ds(st, rem), :] = (xc * scale_l + shift_l).astype(o_ref.dtype)


def _stats_kernel(x_ref, sum_ref, sq_ref):
    """Two-pass path, pass 1: per-(b, p, sublane, lane) partial sum / sumsq."""
    r = pl.program_id(2)

    @pl.when(r == 0)
    def _():
        sum_ref[...] = jnp.zeros_like(sum_ref)
        sq_ref[...] = jnp.zeros_like(sq_ref)

    x = x_ref[0].astype(jnp.float32)                       # (TR, LANE)
    tr, lane = x.shape
    if tr % 8 == 0:
        # VPU-friendly: vreg-group adds; the cross-sublane fold happens once in
        # the JAX glue on the (B, NP, 8, LANE) partials.
        xg = x.reshape(tr // 8, 8, lane)
        sum_ref[0, 0] += jnp.sum(xg, axis=0)               # (8, LANE)
        sq_ref[0, 0] += jnp.sum(xg * xg, axis=0)
    else:
        # Ragged single-tile case (TR == full R, not a multiple of 8).
        sum_ref[0, 0, 0:1, :] += jnp.sum(x, axis=0, keepdims=True)
        sq_ref[0, 0, 0:1, :] += jnp.sum(x * x, axis=0, keepdims=True)


def _norm_kernel(x_ref, scale_ref, shift_ref, o_ref):
    """Two-pass path, pass 2: out = x * scale + shift (f32 compute, cast on store)."""
    x = x_ref[...].astype(jnp.float32)                     # (1, TR, LANE)
    o_ref[...] = (x * scale_ref[...] + shift_ref[...]).astype(o_ref.dtype)


# ------------------------------ Host wrapper ------------------------------- #

def switch_norm_2d(x, weight, bias, mean_weight, var_weight, eps=1e-5,
                   *, fused=None, donate_x=False):
    """Switch_Norm_2D forward (training mode, using_bn=True).

    fused:    None = auto (single fused pallas_call when x fits in VMEM),
              True/False to force a path (True requires the input to fit).
    donate_x: expose input_output_aliases={0:0} on the two-pass normalize call
              for callers that no longer need x.
    """
    B, S, L, C = x.shape
    N = S * L
    total = S * L * C
    itemsize = x.dtype.itemsize

    # ---- lane-dense packing: view the (S, L, C) tail as (R, LANE) rows ------
    lane_lcm = (C * 128) // math.gcd(C, 128)
    if total % lane_lcm == 0 and lane_lcm <= 4096:
        LANE = lane_lcm                   # multiple of 128 -> unmasked vst
    else:
        LANE = C                          # fallback: channels on lanes
    G = LANE // C                         # lane groups per 128-lane row
    R = total // LANE
    xp = x.reshape(B, R, LANE)
    x_bytes = B * R * LANE * itemsize

    # ---- per-generation budgets ---------------------------------------------
    vmem_cap = _tpu_vmem_bytes()
    if vmem_cap <= 64 * 1024 * 1024:      # v7x-class: 64 MiB VMEM, 3.2 TB/s HBM
        tile_target = 6 << 20
        vmem_limit = 40 << 20
    else:                                 # v5e / v6e: 128 MiB VMEM
        tile_target = 4 << 20
        vmem_limit = 32 << 20

    mw = jax.nn.softmax(mean_weight.astype(jnp.float32))
    vw = jax.nn.softmax(var_weight.astype(jnp.float32))
    w2d = weight.reshape(1, C).astype(jnp.float32)
    b2d = bias.reshape(1, C).astype(jnp.float32)

    if fused is None:
        fused = (2 * x_bytes + (8 << 20)) <= int(vmem_cap * 0.65)

    # ======================= Fused single-call path ==========================
    if fused:
        # 0/1 fold matrices: fold[l, c] = 1 iff (l % C) == c; expand = fold.T.
        fold = (jnp.arange(LANE)[:, None] % C
                == jnp.arange(C)[None, :]).astype(jnp.float32)       # (LANE, C)
        expand = fold.T                                              # (C, LANE)

        chunk = min(R, max(8, ((512 * 1024) // (B * LANE * 4)) // 8 * 8))
        kernel = functools.partial(_fused_kernel, n_elem=N, chunk=chunk, eps=eps)
        fused_limit = min(max(vmem_cap - (8 << 20), 16 << 20),
                          2 * x_bytes + (16 << 20))
        out_p = pl.pallas_call(
            kernel,
            out_shape=jax.ShapeDtypeStruct((B, R, LANE), x.dtype),
            in_specs=[
                pl.BlockSpec(memory_space=pltpu.MemorySpace.VMEM),   # x
                pl.BlockSpec(memory_space=pltpu.MemorySpace.VMEM),   # fold
                pl.BlockSpec(memory_space=pltpu.MemorySpace.VMEM),   # expand
                pl.BlockSpec(memory_space=pltpu.MemorySpace.SMEM),   # mean weights
                pl.BlockSpec(memory_space=pltpu.MemorySpace.SMEM),   # var weights
                pl.BlockSpec(memory_space=pltpu.MemorySpace.VMEM),   # weight
                pl.BlockSpec(memory_space=pltpu.MemorySpace.VMEM),   # bias
            ],
            out_specs=pl.BlockSpec(memory_space=pltpu.MemorySpace.VMEM),
            compiler_params=pltpu.CompilerParams(vmem_limit_bytes=fused_limit),
            cost_estimate=pl.CostEstimate(
                flops=7 * B * R * LANE, transcendentals=B * C,
                bytes_accessed=2 * x_bytes),
        )(xp, fold, expand, mw, vw, w2d, b2d)
        return out_p.reshape(B, S, L, C)

    # ========================== Two-pass path ================================
    TR, R_pad = _pick_row_tile(R, LANE, itemsize, tile_target)
    if R_pad != R:
        xp = jnp.pad(xp, ((0, 0), (0, R_pad - R), (0, 0)))   # zeros: stats-neutral
    GR = R_pad // TR
    NP = 2 if (GR % 2 == 0 and GR >= 2) else 1   # extra parallel axis (megacore, small B)
    GRi = GR // NP

    total_elems = B * R_pad * LANE
    stats_cost = pl.CostEstimate(
        flops=3 * total_elems, transcendentals=0,
        bytes_accessed=total_elems * itemsize + 2 * B * NP * 8 * LANE * 4)
    norm_cost = pl.CostEstimate(
        flops=2 * total_elems, transcendentals=0,
        bytes_accessed=2 * total_elems * itemsize + 2 * B * LANE * 4)

    # ---- Pass 1: per-(b, p, sublane, lane) partial sums (accumulate in out) --
    sum_p, sq_p = pl.pallas_call(
        _stats_kernel,
        out_shape=(jax.ShapeDtypeStruct((B, NP, 8, LANE), jnp.float32),
                   jax.ShapeDtypeStruct((B, NP, 8, LANE), jnp.float32)),
        grid=(B, NP, GRi),
        in_specs=[pl.BlockSpec((1, TR, LANE),
                               lambda b, p, r, GRi=GRi: (b, p * GRi + r, 0))],
        out_specs=(pl.BlockSpec((1, 1, 8, LANE), lambda b, p, r: (b, p, 0, 0)),
                   pl.BlockSpec((1, 1, 8, LANE), lambda b, p, r: (b, p, 0, 0))),
        compiler_params=pltpu.CompilerParams(
            dimension_semantics=("parallel", "parallel", "arbitrary"),
            vmem_limit_bytes=vmem_limit),
        cost_estimate=stats_cost,
    )(xp)

    # ---- Tiny (B, C) statistics glue in plain JAX ----------------------------
    sum_c = sum_p.reshape(B, NP * 8, G, C).sum(axis=(1, 2))
    sq_c = sq_p.reshape(B, NP * 8, G, C).sum(axis=(1, 2))

    mean_in = sum_c / N                                   # (B, C)
    denom = max(N - 1, 1)                # torch .var() is unbiased; guard N==1
    var_in = (sq_c - N * mean_in ** 2) / denom
    temp = var_in + mean_in ** 2
    mean_ln = jnp.mean(mean_in, axis=1, keepdims=True)    # (B, 1)
    var_ln = jnp.mean(temp, axis=1, keepdims=True) - mean_ln ** 2
    mean_bn = jnp.mean(mean_in, axis=0, keepdims=True)    # (1, C)
    var_bn = jnp.mean(temp, axis=0, keepdims=True) - mean_bn ** 2

    mean = mw[0] * mean_in + mw[1] * mean_ln + mw[2] * mean_bn    # (B, C)
    var = vw[0] * var_in + vw[1] * var_ln + vw[2] * var_bn        # (B, C)
    var = jnp.maximum(var, 0.0)          # E[x^2]-E[x]^2 cancellation guard
    rstd = jax.lax.rsqrt(var + eps)

    scale = rstd * w2d                                    # (B, C)
    shift = b2d - mean * scale                            # (B, C)
    # f32 hot path: free at HBM-bound rates, avoids bf16 centering cancellation.
    scale_p = jnp.tile(scale, (1, G)).reshape(B, 1, LANE)
    shift_p = jnp.tile(shift, (1, G)).reshape(B, 1, LANE)

    alias = {0: 0} if donate_x else {}
    # ---- Pass 2: lane-dense elementwise normalize (x*scale + shift) ----------
    out_p = pl.pallas_call(
        _norm_kernel,
        out_shape=jax.ShapeDtypeStruct((B, R_pad, LANE), x.dtype),
        grid=(B, GR),
        in_specs=[pl.BlockSpec((1, TR, LANE), lambda b, r: (b, r, 0)),
                  pl.BlockSpec((1, 1, LANE), lambda b, r: (b, 0, 0)),
                  pl.BlockSpec((1, 1, LANE), lambda b, r: (b, 0, 0))],
        out_specs=pl.BlockSpec((1, TR, LANE), lambda b, r: (b, r, 0)),
        compiler_params=pltpu.CompilerParams(
            dimension_semantics=("parallel", "parallel"),
            vmem_limit_bytes=vmem_limit),
        cost_estimate=norm_cost,
        input_output_aliases=alias,
    )(xp, scale_p, shift_p)

    if R_pad != R:
        out_p = out_p[:, :R, :]
    return out_p.reshape(B, S, L, C)


# --------------------------- Pure-JAX reference ---------------------------- #

def switch_norm_2d_ref(x, weight, bias, mean_weight, var_weight, eps=1e-5):
    B, S, L, C = x.shape
    xt = jnp.transpose(x, (0, 3, 1, 2)).reshape(B, C, S * L)
    mean_in = jnp.mean(xt, axis=-1, keepdims=True)
    var_in = jnp.var(xt, axis=-1, keepdims=True, ddof=1)
    mean_ln = jnp.mean(mean_in, axis=1, keepdims=True)
    temp = var_in + mean_in ** 2
    var_ln = jnp.mean(temp, axis=1, keepdims=True) - mean_ln ** 2
    mean_bn = jnp.mean(mean_in, axis=0, keepdims=True)
    var_bn = jnp.mean(temp, axis=0, keepdims=True) - mean_bn ** 2
    mw = jax.nn.softmax(mean_weight)
    vw = jax.nn.softmax(var_weight)
    mean = mw[0] * mean_in + mw[1] * mean_ln + mw[2] * mean_bn
    var = vw[0] * var_in + vw[1] * var_ln + vw[2] * var_bn
    xn = (xt - mean) / jnp.sqrt(var + eps)
    xn = xn.reshape(B, C, S, L)
    xn = jnp.transpose(xn, (0, 2, 3, 1))
    return weight.reshape(1, 1, 1, C) * xn + bias.reshape(1, 1, 1, C)


# ---------------------------------- Main ----------------------------------- #

if __name__ == "__main__":
    key = jax.random.PRNGKey(0)

    def check(shape, idx, random_affine):
        B, S, L, C = shape
        kx, kw, kb = jax.random.split(jax.random.fold_in(key, idx), 3)
        x = jax.random.normal(kx, shape, dtype=jnp.float32) * 2.0 + 0.5
        if random_affine:
            weight = 1.0 + 0.1 * jax.random.normal(kw, (1, 1, 1, C), jnp.float32)
            bias = 0.1 * jax.random.normal(kb, (1, 1, 1, C), jnp.float32)
        else:
            # Mirrors Switch_Norm_2D.reset_parameters (last_gamma=False).
            weight = jnp.ones((1, 1, 1, C), dtype=jnp.float32)
            bias = jnp.zeros((1, 1, 1, C), dtype=jnp.float32)
        mean_weight = jnp.ones((3,), dtype=jnp.float32)
        var_weight = jnp.ones((3,), dtype=jnp.float32)

        ref = switch_norm_2d_ref(x, weight, bias, mean_weight, var_weight)
        for use_fused in (True, False):      # exercise both code paths
            out = switch_norm_2d(x, weight, bias, mean_weight, var_weight,
                                 fused=use_fused)
            out = jax.block_until_ready(out)
            assert out.shape == shape
            assert jnp.allclose(out, ref, rtol=1e-4, atol=1e-4), \
                f"mismatch vs reference: shape={shape} fused={use_fused}"

    # (batch, num_stations, seq_len, in_channels)
    check((2, 4, 16, 16), 0, random_affine=False)   # lane-packed path (LANE=128)
    check((1, 5, 8, 16), 1, random_affine=True)     # B=1, ragged row count (R=5)

    print("KERNEL_OK")
</pallas_src>

<mosaic_0001>
module attributes {stable_mosaic.version = 11 : i64} {
  func.func @_fused_kernel(%arg0: memref<2x8x128xf32, #tpu.memory_space<vmem>>, %arg1: memref<128x16xf32, #tpu.memory_space<vmem>>, %arg2: memref<16x128xf32, #tpu.memory_space<vmem>>, %arg3: memref<3xf32, #tpu.memory_space<smem>>, %arg4: memref<3xf32, #tpu.memory_space<smem>>, %arg5: memref<1x16xf32, #tpu.memory_space<vmem>>, %arg6: memref<1x16xf32, #tpu.memory_space<vmem>>, %arg7: memref<2x8x128xf32, #tpu.memory_space<vmem>>) attributes {dimension_semantics = [], scalar_prefetch = 0 : i64, scratch_operands = 0 : i64, tpu.core_type = #tpu.core_type<tc>} {
    %cst = arith.constant 0.000000e+00 : f32
    %0 = vector.broadcast %cst : f32 to vector<2x128xf32>
    %c0_i32 = arith.constant 0 : i32
    %c8_i32 = arith.constant 8 : i32
    %1 = arith.muli %c0_i32, %c8_i32 : i32
    %2 = tpu.assume_multiple %1, 8 : i32
    %c0 = arith.constant 0 : index
    %3 = arith.index_cast %2 : i32 to index
    %c0_0 = arith.constant 0 : index
    %4 = vector.load %arg0[%c0, %3, %c0_0] : memref<2x8x128xf32, #tpu.memory_space<vmem>>, vector<2x8x128xf32>
    %cst_1 = arith.constant dense<0.000000e+00> : vector<2x128xf32>
    %5 = vector.multi_reduction <add>, %4, %cst_1 [1] : vector<2x8x128xf32> to vector<2x128xf32>
    %6 = arith.mulf %4, %4 : vector<2x8x128xf32>
    %cst_2 = arith.constant dense<0.000000e+00> : vector<2x128xf32>
    %7 = vector.multi_reduction <add>, %6, %cst_2 [1] : vector<2x8x128xf32> to vector<2x128xf32>
    %8 = arith.addf %0, %5 : vector<2x128xf32>
    %9 = arith.addf %0, %7 : vector<2x128xf32>
    %c1_i32 = arith.constant 1 : i32
    %c0_3 = arith.constant 0 : index
    %c0_4 = arith.constant 0 : index
    %10 = vector.load %arg1[%c0_3, %c0_4] : memref<128x16xf32, #tpu.memory_space<vmem>>, vector<128x16xf32>
    %cst_5 = arith.constant dense<0.000000e+00> : vector<2x16xf32>
    %11 = tpu.matmul %8, %10, %cst_5 {dimension_numbers = #tpu.dot_dimension_numbers<[1], [0], [0], [1], [0, 0, 1, 1], [], []>} : vector<2x128xf32>, vector<128x16xf32>, vector<2x16xf32> -> vector<2x16xf32>
    %cst_6 = arith.constant dense<0.000000e+00> : vector<2x16xf32>
    %12 = tpu.matmul %9, %10, %cst_6 {dimension_numbers = #tpu.dot_dimension_numbers<[1], [0], [0], [1], [0, 0, 1, 1], [], []>} : vector<2x128xf32>, vector<128x16xf32>, vector<2x16xf32> -> vector<2x16xf32>
    %cst_7 = arith.constant 6.400000e+01 : f32
    %13 = vector.broadcast %cst_7 : f32 to vector<2x16xf32>
    %14 = arith.divf %11, %13 : vector<2x16xf32>
    %cst_8 = arith.constant 6.400000e+01 : f32
    %15 = vector.broadcast %cst_8 : f32 to vector<2x16xf32>
    %16 = arith.mulf %15, %14 : vector<2x16xf32>
    %17 = arith.mulf %16, %14 : vector<2x16xf32>
    %18 = arith.subf %12, %17 : vector<2x16xf32>
    %cst_9 = arith.constant 6.300000e+01 : f32
    %19 = vector.broadcast %cst_9 : f32 to vector<2x16xf32>
    %20 = arith.divf %18, %19 : vector<2x16xf32>
    %21 = arith.mulf %14, %14 : vector<2x16xf32>
    %22 = arith.addf %20, %21 : vector<2x16xf32>
    %cst_10 = arith.constant dense<0.000000e+00> : vector<2xf32>
    %23 = vector.multi_reduction <add>, %14, %cst_10 [1] : vector<2x16xf32> to vector<2xf32>
    %24 = vector.shape_cast %23 : vector<2xf32> to vector<2x1xf32>
    %cst_11 = arith.constant 1.600000e+01 : f32
    %25 = vector.broadcast %cst_11 : f32 to vector<2x1xf32>
    %26 = arith.divf %24, %25 : vector<2x1xf32>
    %cst_12 = arith.constant dense<0.000000e+00> : vector<2xf32>
    %27 = vector.multi_reduction <add>, %22, %cst_12 [1] : vector<2x16xf32> to vector<2xf32>
    %28 = vector.shape_cast %27 : vector<2xf32> to vector<2x1xf32>
    %cst_13 = arith.constant 1.600000e+01 : f32
    %29 = vector.broadcast %cst_13 : f32 to vector<2x1xf32>
    %30 = arith.divf %28, %29 : vector<2x1xf32>
    %31 = arith.mulf %26, %26 : vector<2x1xf32>
    %32 = arith.subf %30, %31 : vector<2x1xf32>
    %cst_14 = arith.constant dense<0.000000e+00> : vector<16xf32>
    %33 = vector.multi_reduction <add>, %14, %cst_14 [0] : vector<2x16xf32> to vector<16xf32>
    %34 = vector.shape_cast %33 : vector<16xf32> to vector<1x16xf32>
    %cst_15 = arith.constant 2.000000e+00 : f32
    %35 = vector.broadcast %cst_15 : f32 to vector<1x16xf32>
    %36 = arith.divf %34, %35 : vector<1x16xf32>
    %cst_16 = arith.constant dense<0.000000e+00> : vector<16xf32>
    %37 = vector.multi_reduction <add>, %22, %cst_16 [0] : vector<2x16xf32> to vector<16xf32>
    %38 = vector.shape_cast %37 : vector<16xf32> to vector<1x16xf32>
    %cst_17 = arith.constant 2.000000e+00 : f32
    %39 = vector.broadcast %cst_17 : f32 to vector<1x16xf32>
    %40 = arith.divf %38, %39 : vector<1x16xf32>
    %41 = arith.mulf %36, %36 : vector<1x16xf32>
    %42 = arith.subf %40, %41 : vector<1x16xf32>
    %c0_18 = arith.constant 0 : index
    %43 = memref.load %arg3[%c0_18] : memref<3xf32, #tpu.memory_space<smem>>
    %44 = vector.broadcast %43 : f32 to vector<2x16xf32>
    %45 = arith.mulf %44, %14 : vector<2x16xf32>
    %c1 = arith.constant 1 : index
    %46 = memref.load %arg3[%c1] : memref<3xf32, #tpu.memory_space<smem>>
    %47 = vector.broadcast %46 : f32 to vector<2x1xf32>
    %48 = arith.mulf %47, %26 : vector<2x1xf32>
    %49 = vector.broadcast %48 : vector<2x1xf32> to vector<2x16xf32>
    %50 = arith.addf %45, %49 : vector<2x16xf32>
    %c2 = arith.constant 2 : index
    %51 = memref.load %arg3[%c2] : memref<3xf32, #tpu.memory_space<smem>>
    %52 = vector.broadcast %51 : f32 to vector<1x16xf32>
    %53 = arith.mulf %52, %36 : vector<1x16xf32>
    %54 = vector.broadcast %53 : vector<1x16xf32> to vector<2x16xf32>
    %55 = arith.addf %50, %54 : vector<2x16xf32>
    %c0_19 = arith.constant 0 : index
    %56 = memref.load %arg4[%c0_19] : memref<3xf32, #tpu.memory_space<smem>>
    %57 = vector.broadcast %56 : f32 to vector<2x16xf32>
    %58 = arith.mulf %57, %20 : vector<2x16xf32>
    %c1_20 = arith.constant 1 : index
    %59 = memref.load %arg4[%c1_20] : memref<3xf32, #tpu.memory_space<smem>>
    %60 = vector.broadcast %59 : f32 to vector<2x1xf32>
    %61 = arith.mulf %60, %32 : vector<2x1xf32>
    %62 = vector.broadcast %61 : vector<2x1xf32> to vector<2x16xf32>
    %63 = arith.addf %58, %62 : vector<2x16xf32>
    %c2_21 = arith.constant 2 : index
    %64 = memref.load %arg4[%c2_21] : memref<3xf32, #tpu.memory_space<smem>>
    %65 = vector.broadcast %64 : f32 to vector<1x16xf32>
    %66 = arith.mulf %65, %42 : vector<1x16xf32>
    %67 = vector.broadcast %66 : vector<1x16xf32> to vector<2x16xf32>
    %68 = arith.addf %63, %67 : vector<2x16xf32>
    %cst_22 = arith.constant 0.000000e+00 : f32
    %69 = vector.broadcast %cst_22 : f32 to vector<2x16xf32>
    %70 = arith.maximumf %68, %69 : vector<2x16xf32>
    %cst_23 = arith.constant 9.99999974E-6 : f32
    %71 = vector.broadcast %cst_23 : f32 to vector<2x16xf32>
    %72 = arith.addf %70, %71 : vector<2x16xf32>
    %73 = math.rsqrt %72 : vector<2x16xf32>
    %c0_24 = arith.constant 0 : index
    %c0_25 = arith.constant 0 : index
    %74 = vector.load %arg5[%c0_24, %c0_25] : memref<1x16xf32, #tpu.memory_space<vmem>>, vector<1x16xf32>
    %75 = vector.broadcast %74 : vector<1x16xf32> to vector<2x16xf32>
    %76 = arith.mulf %73, %75 : vector<2x16xf32>
    %c0_26 = arith.constant 0 : index
    %c0_27 = arith.constant 0 : index
    %77 = vector.load %arg6[%c0_26, %c0_27] : memref<1x16xf32, #tpu.memory_space<vmem>>, vector<1x16xf32>
    %78 = arith.mulf %55, %76 : vector<2x16xf32>
    %79 = vector.broadcast %77 : vector<1x16xf32> to vector<2x16xf32>
    %80 = arith.subf %79, %78 : vector<2x16xf32>
    %c0_28 = arith.constant 0 : index
    %c0_29 = arith.constant 0 : index
    %81 = vector.load %arg2[%c0_28, %c0_29] : memref<16x128xf32, #tpu.memory_space<vmem>>, vector<16x128xf32>
    %cst_30 = arith.constant dense<0.000000e+00> : vector<2x128xf32>
    %82 = tpu.matmul %76, %81, %cst_30 {dimension_numbers = #tpu.dot_dimension_numbers<[1], [0], [0], [1], [0, 0, 1, 1], [], []>} : vector<2x16xf32>, vector<16x128xf32>, vector<2x128xf32> -> vector<2x128xf32>
    %83 = vector.shape_cast %82 : vector<2x128xf32> to vector<2x1x128xf32>
    %cst_31 = arith.constant dense<0.000000e+00> : vector<2x128xf32>
    %84 = tpu.matmul %80, %81, %cst_31 {dimension_numbers = #tpu.dot_dimension_numbers<[1], [0], [0], [1], [0, 0, 1, 1], [], []>} : vector<2x16xf32>, vector<16x128xf32>, vector<2x128xf32> -> vector<2x128xf32>
    %85 = vector.shape_cast %84 : vector<2x128xf32> to vector<2x1x128xf32>
    %c0_i32_32 = arith.constant 0 : i32
    %c8_i32_33 = arith.constant 8 : i32
    %86 = arith.muli %c0_i32_32, %c8_i32_33 : i32
    %87 = tpu.assume_multiple %86, 8 : i32
    %c0_34 = arith.constant 0 : index
    %88 = arith.index_cast %87 : i32 to index
    %c0_35 = arith.constant 0 : index
    %89 = vector.load %arg0[%c0_34, %88, %c0_35] : memref<2x8x128xf32, #tpu.memory_space<vmem>>, vector<2x8x128xf32>
    %90 = vector.broadcast %83 : vector<2x1x128xf32> to vector<2x8x128xf32>
    %91 = arith.mulf %89, %90 : vector<2x8x128xf32>
    %92 = vector.broadcast %85 : vector<2x1x128xf32> to vector<2x8x128xf32>
    %93 = arith.addf %91, %92 : vector<2x8x128xf32>
    %c0_36 = arith.constant 0 : index
    %94 = arith.index_cast %87 : i32 to index
    %c0_37 = arith.constant 0 : index
    %95 = vector.load %arg7[%c0_36, %94, %c0_37] : memref<2x8x128xf32, #tpu.memory_space<vmem>>, vector<2x8x128xf32>
    tpu.vector_store %arg7[%c0_36, %94, %c0_37], %93 {strides = array<i32>} : memref<2x8x128xf32, #tpu.memory_space<vmem>>, vector<2x8x128xf32>,
    %c1_i32_38 = arith.constant 1 : i32
    return
  }
}

</mosaic_0001>

<bundles_post_ra>
// kernel: tpu_custom_call.1
= control target key start
LH: loop header
LB: loop body
LE: loop exit
PB: predicated region body
PF: predicated region fallthrough
CT: control target
= control target key end

     0   :  { %12 = vsyncpa [#allocation4], 0  ;;  %s945_s0 = inlined_call_operand.vmem [shape: f32[2,8,128], index: 0, kind: input, shape index: {}]   ;;  %s946_s1 = inlined_call_operand.vmem [shape: f32[128,16], index: 1, kind: input, shape index: {}]   ;;  %s947_s2 = inlined_call_operand.vmem [shape: f32[16,128], index: 2, kind: input, shape index: {}]   ;;  %s948_s3 = inlined_call_operand.vmem [shape: f32[3], index: 3, kind: input, shape index: {}]   ;;  %s949_s4 = inlined_call_operand.vmem [shape: f32[3], index: 4, kind: input, shape index: {}]   ;;  %s950_s5 = inlined_call_operand.vmem [shape: f32[1,16], index: 5, kind: input, shape index: {}]   ;;  %s951_s6 = inlined_call_operand.vmem [shape: f32[1,16], index: 6, kind: input, shape index: {}]   ;;  %s952_s7 = inlined_call_operand.hbm [shape: f32[2,8,128], index: 7, kind: output, shape index: {}]  }
   0x1   :  { %13 = vsyncpa [#allocation6], 0 }
   0x2   :  { %14 = vsyncpa [#allocation3], 0  ;;  %s27_s26 = sshll.u32 %s948_s3, 4  ;;  %s37_s29 = sshll.u32 %s949_s4, 4  ;;  %s28_s26 = int_to_ptr.vmem [resolvable:$true] %s27_s26  ;;  %s38_s29 = int_to_ptr.vmem [resolvable:$true] %s37_s29 }
   0x3   :  { %s710_s30 = scalar_lea.vmem %s28_s26, 16  ;;  %p715_p1 = scmp.lt.s32.totalorder %s28_s26, %s28_s26 }
   0x4   :  { %p711_p0 = scmp.ne.s32.totalorder %s28_s26, %s710_s30  ;;  %p716_p2 = scmp.lt.s32.totalorder %s710_s30, %s710_s30 }
   0x6   :  { %p717_p3 = por %p716_p2, %p715_p1 }
   0x8   :  { %p718_p4 = pnand %p717_p3, %p711_p0 }
   0xa   :  { %721 = shalt.err (!%p718_p4)
}
   0xb   :  { %s760_s8 = smov [#allocation2]   ;;  %s722_s9 = scalar_lea.vmem %s38_s29, 16 }
   0xc   :  { %30 = dma.vmem_to_smem %s28_s26, 16, %s760_s8, [#allocation4]  }
   0xd   :  { %p723_p5 = scmp.ne.s32.totalorder %s38_s29, %s722_s9  ;;  %p727_p6 = scmp.lt.s32.totalorder %s38_s29, %s38_s29 }
   0xe   :  { %p728_p7 = scmp.lt.s32.totalorder %s722_s9, %s722_s9 }
  0x10   :  { %p729_p8 = por %p728_p7, %p727_p6 }
  0x12   :  { %p730_p9 = pnand %p729_p8, %p723_p5 }
  0x14   :  { %733 = shalt.err (!%p730_p9)
}
  0x15   :  { %s761_s3 = smov [#allocation5]  }
  0x16   :  { %40 = dma.vmem_to_smem %s38_s29, 16, %s761_s3, [#allocation6]  }
  0x17   :  { %754 = dma.done.wait [#allocation4], 16  }
  0x18   :  { %755 = vsyncadd [#allocation4], 4294967280 }
  0x19   :  { %756 = dma.done.wait [#allocation6], 16  }
  0x1a   :  { %757 = vsyncadd [#allocation6], 4294967280 }
  0x1b   :  { %51 = sfence }
  0x1c   :  { %v99_v0 = vld [vmem:[%s946_s1 + $0x78] sm:$0xff]  ;;  %v762_v1 = vmov 0.0   ;;  %v98_v2 = vld [vmem:[%s946_s1 + $0x70] sm:$0xff]  ;;  %v97_v3 = vld [vmem:[%s946_s1 + $0x68] sm:$0xff]  ;;  %vm102_vm0 = vcmask 1041409   ;;  %vm763_vm1 = vmmov 0  }
  0x1d   :  { %616 = vmatprep.subr.mxu0 %v762_v1  ;;  %651 = vmatprep.subr.mxu1 %v762_v1  ;;  %v96_v4 = vld [vmem:[%s946_s1 + $0x60] sm:$0xff]  ;;  %v840_v6 = vld [vmem:[%s945_s0 + $0x8] sm:$0xff]  ;;  %v95_v11 = vld [vmem:[%s946_s1 + $0x58] sm:$0xff]  ;;  %vm258_vm2 = vcmask 123904   ;;  %s287_s22 = sld [smem:[#allocation2]]  ;;  %vm331_vm3 = vcmask 130048  }
  0x1e   :  { %617 = vmatpush3.msra.mxu0 %v99_v0  ;;  %652 = vmatpush3.msra.mxu1 %v99_v0  ;;  %v835_v5 = vld [vmem:[%s945_s0] sm:$0xff]  ;;  %v60_v8 = vrot.slane %v840_v6, 4  ;;  %v67_v10 = vmul.f32 %v840_v6, %v840_v6  ;;  %v94_v14 = vld [vmem:[%s946_s1 + $0x50] sm:$0xff]  ;;  %v93_v17 = vld [vmem:[%s946_s1 + $0x48] sm:$0xff]  ;;  %s568_s0 = sld [smem:[#allocation2 + $0x1]] }
  0x1f   :  { %618 = vmatprep.subr.mxu0 %v762_v1  ;;  %653 = vmatprep.subr.mxu1 %v762_v1  ;;  %v54_v7 = vrot.slane %v835_v5, 4  ;;  %v66_v9 = vmul.f32 %v835_v5, %v835_v5  ;;  %v92_v20 = vld [vmem:[%s946_s1 + $0x40] sm:$0xff]  ;;  %v91_v23 = vld [vmem:[%s946_s1 + $0x38] sm:$0xff]  ;;  %v90_v26 = vld [vmem:[%s946_s1 + $0x30] sm:$0xff]  ;;  %s569_s23 = sld [smem:[#allocation2 + $0x2]] }
  0x20   :  { %619 = vmatpush3.msra.mxu0 %v98_v2  ;;  %654 = vmatpush3.msra.mxu1 %v98_v2  ;;  %v74_v13 = vrot.slane %v67_v10, 4  ;;  %v61_v16 = vadd.f32 %v60_v8, %v840_v6  ;;  %v89_v29 = vld [vmem:[%s946_s1 + $0x28] sm:$0xff]  ;;  %v88_v32 = vld [vmem:[%s946_s1 + $0x20] sm:$0xff]  ;;  %v87_v35 = vld [vmem:[%s946_s1 + $0x18] sm:$0xff]  ;;  %s298_s24 = sld [smem:[#allocation5]] }
  0x21   :  { %620 = vmatprep.subr.mxu0 %v762_v1  ;;  %655 = vmatprep.subr.mxu1 %v762_v1  ;;  %v68_v12 = vrot.slane %v66_v9, 4  ;;  %v55_v15 = vadd.f32 %v54_v7, %v835_v5  ;;  %v86_v38 = vld [vmem:[%s946_s1 + $0x10] sm:$0xff]  ;;  %v85_v41 = vld [vmem:[%s946_s1 + $0x8] sm:$0xff]  ;;  %v84_v44 = vld [vmem:[%s946_s1] sm:$0xff]  ;;  %s571_s25 = sld [smem:[#allocation5 + $0x2]] }
  0x22   :  { %621 = vmatpush3.msra.mxu0 %v97_v3  ;;  %656 = vmatpush3.msra.mxu1 %v97_v3  ;;  %v75_v19 = vadd.f32 %v74_v13, %v67_v10  ;;  %v62_v22 = vrot.slane %v61_v16, 2 }
  0x23   :  { %622 = vmatprep.subr.mxu0 %v762_v1  ;;  %657 = vmatprep.subr.mxu1 %v762_v1  ;;  %v69_v18 = vadd.f32 %v68_v12, %v66_v9  ;;  %v56_v21 = vrot.slane %v55_v15, 2 }
  0x24   :  { %623 = vmatpush3.msra.mxu0 %v96_v4  ;;  %658 = vmatpush3.msra.mxu1 %v96_v4  ;;  %v76_v25 = vrot.slane %v75_v19, 2  ;;  %v63_v28 = vadd.f32 %v62_v22, %v61_v16  ;;  %v329_v16 = vld [vmem:[%s947_s2] sm:$0xff] }
  0x25   :  { %624 = vmatprep.subr.mxu0 %v762_v1  ;;  %659 = vmatprep.subr.mxu1 %v762_v1  ;;  %v70_v24 = vrot.slane %v69_v18, 2  ;;  %v57_v27 = vadd.f32 %v56_v21, %v55_v15  ;;  %v330_v15 = vld [vmem:[%s947_s2 + $0x8] sm:$0xff]  ;;  %v295_v21 = vstv %s569_s23  ;;  %s570_s2 = sld [smem:[#allocation5 + $0x1]] }
  0x26   :  { %625 = vmatpush3.msra.mxu0 %v95_v11  ;;  %660 = vmatpush3.msra.mxu1 %v95_v11  ;;  %v77_v31 = vadd.f32 %v76_v25, %v75_v19  ;;  %v64_v34 = vrot.slane %v63_v28, 1 }
  0x27   :  { %626 = vmatprep.subr.mxu0 %v762_v1  ;;  %661 = vmatprep.subr.mxu1 %v762_v1  ;;  %v71_v30 = vadd.f32 %v70_v24, %v69_v18  ;;  %v58_v33 = vrot.slane %v57_v27, 1  ;;  %v291_v18 = vstv %s568_s0 }
  0x28   :  { %627 = vmatpush3.msra.mxu0 %v94_v14  ;;  %662 = vmatpush3.msra.mxu1 %v94_v14  ;;  %v78_v37 = vrot.slane %v77_v31, 1  ;;  %v65_v40 = vadd.f32 %v64_v34, %v63_v28 }
  0x29   :  { %628 = vmatprep.subr.mxu0 %v762_v1  ;;  %663 = vmatprep.subr.mxu1 %v762_v1  ;;  %v72_v36 = vrot.slane %v71_v30, 1  ;;  %v59_v39 = vadd.f32 %v58_v33, %v57_v27 }
  0x2a   :  { %629 = vmatpush3.msra.mxu0 %v93_v17  ;;  %664 = vmatpush3.msra.mxu1 %v93_v17  ;;  %v79_v43 = vadd.f32 %v78_v37, %v77_v31  ;;  %v288_v17 = vstv %s287_s22 }
  0x2b   :  { %630 = vmatprep.subr.mxu0 %v762_v1  ;;  %665 = vmatprep.subr.mxu1 %v762_v1  ;;  %v73_v42 = vadd.f32 %v72_v36, %v71_v30  ;;  %v103_v45 = vsel %vm102_vm0, %v65_v40, %v59_v39  ;;  %v302_v30 = vstv %s570_s2  ;;  %v572_v40 = vld [vmem:[%s950_s5] ss:$0 sm:$0xff]  ;;  %s765_s5 = smov [#allocation7]  }
  0x2c   :  { %631 = vmatpush3.msra.mxu0 %v92_v20  ;;  %666 = vmatpush3.msra.mxu1 %v92_v20 }
  0x2d   :  { %632 = vmatprep.subr.mxu0 %v762_v1  ;;  %667 = vmatprep.subr.mxu1 %v762_v1  ;;  %v177_v46 = vsel %vm102_vm0, %v79_v43, %v73_v42  ;;  %v573_v43 = vld [vmem:[%s951_s6] ss:$0 sm:$0xff]  ;;  %s555_s6 = sshll.u32 %s765_s5, 4  ;;  %s556_s6 = int_to_ptr.vmem [resolvable:$true] %s555_s6 }
  0x2e   :  { %633 = vmatpush3.msra.mxu0 %v91_v23  ;;  %668 = vmatpush3.msra.mxu1 %v91_v23  ;;  %s734_s30 = scalar_lea.vmem %s556_s6, 256  ;;  %p739_p11 = scmp.lt.s32.totalorder %s556_s6, %s556_s6 }
  0x2f   :  { %634 = vmatprep.subr.mxu0 %v762_v1  ;;  %669 = vmatprep.subr.mxu1 %v762_v1  ;;  %p735_p10 = scmp.ne.s32.totalorder %s556_s6, %s734_s30  ;;  %p740_p12 = scmp.lt.s32.totalorder %s734_s30, %s734_s30 }
  0x30   :  { %635 = vmatpush3.msra.mxu0 %v90_v26  ;;  %670 = vmatpush3.msra.mxu1 %v90_v26 }
  0x31   :  { %636 = vmatprep.subr.mxu0 %v762_v1  ;;  %671 = vmatprep.subr.mxu1 %v762_v1  ;;  %p741_p13 = por %p740_p12, %p739_p11 }
  0x32   :  { %637 = vmatpush3.msra.mxu0 %v89_v29  ;;  %672 = vmatpush3.msra.mxu1 %v89_v29  ;;  %v299_v29 = vstv %s298_s24 }
  0x33   :  { %638 = vmatprep.subr.mxu0 %v762_v1  ;;  %673 = vmatprep.subr.mxu1 %v762_v1  ;;  %p742_p0 = pnand %p741_p13, %p735_p10 }
  0x34   :  { %639 = vmatpush3.msra.mxu0 %v88_v32  ;;  %674 = vmatpush3.msra.mxu1 %v88_v32  ;;  %v306_v32 = vstv %s571_s25 }
  0x35   :  { %640 = vmatprep.subr.mxu0 %v762_v1  ;;  %675 = vmatprep.subr.mxu1 %v762_v1 }
  0x36   :  { %641 = vmatpush3.msra.mxu0 %v87_v35  ;;  %676 = vmatpush3.msra.mxu1 %v87_v35 }
  0x37   :  { %642 = vmatprep.subr.mxu0 %v762_v1  ;;  %677 = vmatprep.subr.mxu1 %v762_v1 }
  0x38   :  { %643 = vmatpush3.msra.mxu0 %v86_v38  ;;  %648 = vmatprep.mubr.msk.f32.mxu0 %vm763_vm1, %v762_v1 }
  0x39   :  { %644 = vmatprep.subr.mxu0 %v762_v1  ;;  %678 = vmatpush3.msra.mxu1 %v86_v38 }
  0x3a   :  { %645 = vmatpush3.msra.mxu0 %v85_v41  ;;  %679 = vmatprep.subr.mxu1 %v762_v1 }
  0x3b   :  { %646 = vmatprep.subr.mxu0 %v762_v1  ;;  %680 = vmatpush3.msra.mxu1 %v85_v41 }
  0x3c   :  { %647 = vmatpush3.msra.mxu0 %v84_v44  ;;  %681 = vmatprep.subr.mxu1 %v762_v1 }
  0x3d   :  { %649 = vmatmul.mubr.f32.vlgmr.msra.gmra.mxu0 %v103_v45  ;;  %682 = vmatpush3.msra.mxu1 %v84_v44 }
  0x3e   :  { %683 = vmatprep.mubr.msk.f32.mxu1 %vm763_vm1, %v762_v1  ;;  %686 = vmatprep.subr.mxu0 %v762_v1 }
  0x3f   :  { %684 = vmatmul.mubr.f32.vlgmr.msra.gmra.mxu1 %v177_v46  ;;  %690 = vmatprep.mubr.msk.f32.mxu0 %vm763_vm1, %v762_v1  ;;  %v764_v46 = vmov 1966171168  }
  0x40   :  { %693 = vmatprep.subr.mxu1 %v762_v1  ;;  %697 = vmatprep.mubr.msk.f32.mxu1 %vm763_vm1, %v762_v1 }
  0x41   :  { %687 = vmatpush3.msra.mxu0 %v330_v15  ;;  %694 = vmatpush3.msra.mxu1 %v330_v15 }
  0x42   :  { %688 = vmatprep.subr.mxu0 %v762_v1  ;;  %695 = vmatprep.subr.mxu1 %v762_v1 }
  0x43   :  { %689 = vmatpush3.msra.mxu0 %v329_v16  ;;  %696 = vmatpush3.msra.mxu1 %v329_v16 }
  0xfd   :  { %v171_v47 = vpop.f32.mrf.mxu0 }
  0xfe   :  { %v250_v48 = vmul.f32 0.015625, %v171_v47  ;;  %v407_v47 = vunpack.c.l.s4 %v764_v46 }
  0xff   :  { %v650_v49 = vpop.f32.mrf.mxu0  ;;  %v245_v50 = vpop.f32.mrf.mxu1 }
 0x100   :  { %v251_v51 = vmul.f32 64.0, %v250_v48  ;;  %v259_v52 = vsel %vm258_vm2, %v250_v48, 0.0  ;;  %v256_v60 = vmul.f32 %v250_v48, %v250_v48  ;;  %v289_v22 = vmul.f32 %v288_v17, %v250_v48 }
 0x101   :  { %260 = vadd.xlane.f32.xlu0 %v259_v52  ;;  %v270_v53 = vrot.slane %v259_v52, 4  ;;  %v685_v54 = vpop.f32.mrf.mxu1  ;;  %v408_v49 = vunpack.c.0.s8 %v407_v47 }
 0x102   :  { %v252_v55 = vmul.f32 %v251_v51, %v250_v48  ;;  %v409_v48 = vlaneseq }
 0x103   :  { %v271_v56 = vadd.f32 %v270_v53, %v259_v52 }
 0x104   :  { %v253_v57 = vsub.f32 %v245_v50, %v252_v55  ;;  %v410_v50 = vshrl.u32 %v409_v48, 7 }
 0x105   :  { %v272_v58 = vrot.slane %v271_v56, 2 }
 0x106   :  { %v255_v59 = vmul.f32 0.015873017, %v253_v57  ;;  %v411_v51 = vsub.s32 %v408_v49, %v410_v50  ;;  %v526_v54 = vsub.s32 0, %v410_v50 }
 0x107   :  { %v273_v61 = vadd.f32 %v272_v58, %v271_v56 }
 0x108   :  { %v257_v62 = vadd.f32 %v256_v60, %v255_v59  ;;  %v300_v33 = vmul.f32 %v299_v29, %v255_v59 }
 0x109   :  { %v274_v0 = vrot.slane %v273_v61, 1 }
 0x10a   :  { %v264_v63 = vsel %vm258_vm2, %v257_v62, 0.0 }
 0x10b   :  { %265 = vadd.xlane.f32.xlu0 %v264_v63  ;;  %v278_v2 = vrot.slane %v264_v63, 4  ;;  %v275_v4 = vadd.f32 %v274_v0, %v273_v61 }
 0x10d   :  { %v279_v3 = vadd.f32 %v278_v2, %v264_v63  ;;  %v277_v9 = vmul.f32 0.5, %v275_v4 }
 0x10f   :  { %v280_v7 = vrot.slane %v279_v3, 2  ;;  %v285_v12 = vmul.f32 %v277_v9, %v277_v9  ;;  %v296_v25 = vmul.f32 %v295_v21, %v277_v9 }
 0x111   :  { %v281_v8 = vadd.f32 %v280_v7, %v279_v3 }
 0x113   :  { %v282_v10 = vrot.slane %v281_v8, 1 }
 0x115   :  { %v283_v11 = vadd.f32 %v282_v10, %v281_v8 }
 0x117   :  { %v284_v13 = vmul.f32 0.5, %v283_v11 }
 0x119   :  { %v286_v14 = vsub.f32 %v284_v13, %v285_v12 }
 0x11b   :  { %v307_v36 = vmul.f32 %v306_v32, %v286_v14 }
 0x18a   :  { %v261_v19 = vpop.xlane.xlu0 %260 }
 0x18b   :  { %v263_v20 = vmul.f32 0.0625, %v261_v19 }
 0x18d   :  { %v292_v23 = vmul.f32 %v291_v18, %v263_v20  ;;  %v268_v1 = vmul.f32 %v263_v20, %v263_v20 }
 0x18f   :  { %v293_v24 = vadd.f32 %v292_v23, %v289_v22 }
 0x191   :  { %v297_v26 = vadd.f32 %v296_v25, %v293_v24 }
 0x194   :  { %v266_v27 = vpop.xlane.xlu0 %265 }
 0x195   :  { %v267_v28 = vmul.f32 0.0625, %v266_v27 }
 0x197   :  { %v269_v31 = vsub.f32 %v267_v28, %v268_v1 }
 0x199   :  { %v303_v34 = vmul.f32 %v302_v30, %v269_v31 }
 0x19b   :  { %v304_v35 = vadd.f32 %v303_v34, %v300_v33 }
 0x19d   :  { %v308_v37 = vadd.f32 %v307_v36, %v304_v35 }
 0x19f   :  { %v309_v38 = vmax.f32 %v308_v37, 0.0 }
 0x1a1   :  { %v310_v39 = vadd.f32 1e-05, %v309_v38 }
 0x1a3   :  { %708 = vrsqrt.f32 %v310_v39 }
 0x1b0   :  { %v709_v41 = vpop.eup %708 }
 0x1b1   :  { %v319_v42 = vmul.f32 %v709_v41, %v572_v40 }
 0x1b3   :  { %691 = vmatmul.mubr.msk.f32.vlgmr.msra.gmra.mxu0 %vm331_vm3, %v319_v42  ;;  %v321_v44 = vmul.f32 %v319_v42, %v297_v26 }
 0x1b5   :  { %v328_v45 = vsub.f32 %v573_v43, %v321_v44 }
 0x1b7   :  { %698 = vmatmul.mubr.msk.f32.vlgmr.msra.gmra.mxu1 %vm331_vm3, %v328_v45 }
 0x273   :  { %v401_v52 = vpop.f32.mrf.mxu0 }
 0x274   :  { %v412_v53 = vrot.slane %v401_v52, %v411_v51 }
 0x275   :  { %v692_v55 = vpop.f32.mrf.mxu0 }
 0x276   :  { %v413_v56 = vcombine.high %v412_v53, %v412_v53  ;;  %v420_v57 = vrot.slane %v412_v53, %v411_v51 }
 0x277   :  { %v497_v58 = vpop.f32.mrf.mxu1 }
 0x278   :  { %v427_v59 = vrot.slane %v413_v56, %v411_v51  ;;  %v527_v60 = vrot.slane %v420_v57, %v526_v54  ;;  %v508_v61 = vrot.slane %v497_v58, %v411_v51 }
 0x279   :  { %v699_v62 = vpop.f32.mrf.mxu1 }
 0x27a   :  { %v531_v63 = vrot.slane %v427_v59, %v526_v54  ;;  %v509_v0 = vcombine.high %v508_v61, %v508_v61  ;;  %v516_v2 = vrot.slane %v508_v61, %v411_v51  ;;  %v534_v3 = vmul.f32 %v527_v60, %v835_v5 }
 0x27c   :  { %v523_v4 = vrot.slane %v509_v0, %v411_v51  ;;  %v539_v7 = vrot.slane %v516_v2, %v526_v54  ;;  %v535_v9 = vmul.f32 %v531_v63, %v840_v6 }
 0x27e   :  { %v543_v8 = vrot.slane %v523_v4, %v526_v54  ;;  %v546_v10 = vadd.f32 %v539_v7, %v534_v3 }
 0x280   :  { %v547_v11 = vadd.f32 %v543_v8, %v535_v9  ;;  %548 = vst [vmem:[#allocation7] sm:$0xff] %v546_v10 }
 0x282   :  { %549 = vst [vmem:[#allocation7 + $0x8] sm:$0xff] %v547_v11 }
 0x283   :  { %745 = shalt.err (!%p742_p0)
}
 0x284   :  { %s766_s8 = smov 128   ;;  %s767_s9 = smov 8  }
 0x285   :  { %561 = dma.vmem_to_hbm [thread:$0]  %s556_s6, 256, %s952_s7, [#allocation3], %s766_s8, %s766_s8, %s767_s9  }
 0x286   :  { %758 = dma.done.wait [#allocation3], 256  }
 0x287   :  { %759 = vsyncadd [#allocation3], 4294967040 }
 0x288   :  { %565 = vsyncpa [#allocation3], 1 }
 0x289   :  { %566 = vsyncpa [#allocation4], 1 }
 0x28a   :  { %567 = vsyncpa [#allocation6], 1 }

</bundles_post_ra>
